<compile_context>
chip_gen: v7x
topology: tpu7x:2x2x1
jax: 0.10.0
libtpu: 0.0.40
codegen_flags: <defaults>
</compile_context>

<pallas_src>
import jax
import jax.numpy as jnp
from jax.experimental import pallas as pl
from jax.experimental.pallas import tpu as pltpu


def _round_up(x, m):
    return ((x + m - 1) // m) * m


def _mlp_kernel(x_ref, w1_ref, b1_ref, w2_ref, b2_ref, w3_ref, b3_ref, o_ref):
    """One batch tile (batch on lanes) per grid step; weights are resident.

    x_ref : (17, tb)  bf16   streamed
    w1_ref: (128, 17) bf16   resident     b1_ref: (128, 1) f32
    w2_ref: (17, 128) bf16   resident     b2_ref: (17, 1)  f32
    w3_ref: (17, 1)   f32    resident     b3_ref: (1, 1)   f32
    o_ref : (1, tb)   f32    lane-dense output
    """
    x = x_ref[...]                                                       # bf16 (17, tb)

    # fc1: bf16 MXU matmul, f32 accumulate; bias/ReLU in f32 (v5e-safe).
    h1 = jnp.dot(w1_ref[...], x, preferred_element_type=jnp.float32)    # (128, tb)
    h1 = jnp.maximum(h1 + b1_ref[...], 0.0)

    # fc2: cast the (128, tb) activation to bf16 -> halves VMEM ld/st traffic
    # and feeds the MXU natively.
    h2 = jnp.dot(w2_ref[...], h1.astype(jnp.bfloat16),
                 preferred_element_type=jnp.float32)                    # (17, tb)
    h2 = jnp.maximum(h2 + b2_ref[...], 0.0)

    # fc3: output width 1 -> VPU multiply + sublane reduce (keeps the MXU free;
    # an MXU matmul here would use ~1/128 of the result tile).
    y = jnp.sum(h2 * w3_ref[...], axis=0, keepdims=True)                # (1, tb)
    o_ref[...] = y + b3_ref[...]


def covid_fc_forward(x, params, *, block_batch=8192):
    """Fused MLP forward. x: (B, 17) float32 -> (B, 1) float32.

    Weights are taken in PyTorch-native (out, in) orientation and transformed
    once here (transpose-free in this layout; only cast/reshape).  X is
    relayouted once to feature-major (17, B) so the batch rides on lanes
    inside the kernel.
    """
    w1, b1, w2, b2, w3, b3 = params
    B, F = x.shape
    assert F == 17, x.shape

    # --- tile selection (lanes come in 128s) -------------------------------
    b_ceil = _round_up(max(B, 1), 128)
    tb = min(_round_up(block_batch, 128), b_ceil)
    # Keep >= 2 grid steps when the batch spans more than one lane tile so the
    # "parallel" batch axis actually feeds both TensorCores on v7x.
    if b_ceil >= 256 and tb >= b_ceil:
        tb = _round_up(b_ceil // 2, 128)
    b_pad = _round_up(B, tb)
    num_tiles = b_pad // tb

    # --- one-time wrapper-side transforms (never re-run per grid step) -----
    xt = x.T.astype(jnp.bfloat16)                       # (17, B)  bf16 MXU operand
    if b_pad != B:
        # Padded columns compute ReLU(b1)-propagated garbage; sliced off below.
        xt = jnp.pad(xt, ((0, 0), (0, b_pad - B)))
    w1_bf = w1.astype(jnp.bfloat16)                     # (128, 17)
    w2_bf = w2.astype(jnp.bfloat16)                     # (17, 128)
    b1_c = b1.reshape(128, 1).astype(jnp.float32)
    b2_c = b2.reshape(17, 1).astype(jnp.float32)
    w3_c = w3.reshape(17, 1).astype(jnp.float32)        # fc3 weight as a column
    b3_c = b3.reshape(1, 1).astype(jnp.float32)

    const = lambda i: (0, 0)  # resident blocks: DMA'd once, reused every step
    out = pl.pallas_call(
        _mlp_kernel,
        out_shape=jax.ShapeDtypeStruct((1, b_pad), jnp.float32),
        grid=(num_tiles,),
        in_specs=[
            pl.BlockSpec((17, tb), lambda i: (0, i)),   # x: streamed per tile
            pl.BlockSpec((128, 17), const),             # w1 (resident, bf16)
            pl.BlockSpec((128, 1), const),              # b1
            pl.BlockSpec((17, 128), const),             # w2 (resident, bf16)
            pl.BlockSpec((17, 1), const),               # b2
            pl.BlockSpec((17, 1), const),               # w3 column
            pl.BlockSpec((1, 1), const),                # b3
        ],
        out_specs=pl.BlockSpec((1, tb), lambda i: (0, i)),   # lane-dense output
        compiler_params=pltpu.CompilerParams(
            dimension_semantics=("parallel",),          # megacore sharding on v7x
            vmem_limit_bytes=32 * 1024 * 1024,          # headroom for tb=8192
        ),
    )(xt, w1_bf, b1_c, w2_bf, b2_c, w3_c, b3_c)
    return out[0, :B].reshape(B, 1)


def init_params(key):
    """PyTorch-native (out, in) weights; nn.Linear default init
    U(-1/sqrt(fan_in), 1/sqrt(fan_in)) for weight and bias."""
    def uniform(k, shape, fan_in):
        bound = 1.0 / jnp.sqrt(jnp.float32(fan_in))
        return jax.random.uniform(k, shape, jnp.float32, -bound, bound)

    ks = jax.random.split(key, 6)
    w1 = uniform(ks[0], (128, 17), 17)
    b1 = uniform(ks[1], (128,), 17)
    w2 = uniform(ks[2], (17, 128), 128)
    b2 = uniform(ks[3], (17,), 128)
    w3 = uniform(ks[4], (1, 17), 17)
    b3 = uniform(ks[5], (1,), 17)
    return (w1, b1, w2, b2, w3, b3)


def reference_forward(x, params):
    """Pure-JAX f32 reference (the comparison baseline is f32, not f64)."""
    w1, b1, w2, b2, w3, b3 = params
    h1 = jnp.maximum(x @ w1.T + b1, 0.0)
    h2 = jnp.maximum(h1 @ w2.T + b2, 0.0)
    return h2 @ w3.T + b3


def reference_forward_bf16_ops(x, params):
    """Reference matching the kernel numerics: bf16 matmul operands,
    f32 accumulation, f32 bias/ReLU/fc3."""
    w1, b1, w2, b2, w3, b3 = params
    bf = lambda a: a.astype(jnp.bfloat16).astype(jnp.float32)
    h1 = jnp.maximum(bf(x) @ bf(w1).T + b1, 0.0)
    h2 = jnp.maximum(bf(h1) @ bf(w2).T + b2, 0.0)
    return h2 @ w3.T + b3


if __name__ == "__main__":
    key = jax.random.PRNGKey(0)
    kp, kx = jax.random.split(key)

    params = init_params(kp)
    B = 300                                   # not a multiple of 128 on purpose
    x = jax.random.normal(kx, (B, 17), jnp.float32)

    # Small tile -> multi-step grid (grid=3): exercises resident weights,
    # streamed tiles, padding of the last partial tile, and output slicing.
    out = covid_fc_forward(x, params, block_batch=128)
    out = jax.block_until_ready(out)
    assert out.shape == (B, 1), out.shape

    ref_bf = reference_forward_bf16_ops(x, params)
    ref_f32 = reference_forward(x, params)
    # Tight check against the numerics-matched (bf16-operand) reference.
    assert jnp.allclose(out, ref_bf, atol=1e-3, rtol=1e-3), (out, ref_bf)
    # Looser sanity check against the plain f32 reference.
    assert jnp.allclose(out, ref_f32, atol=3e-2, rtol=3e-2), (out, ref_f32)

    # Default path: large block_batch gets split so the grid keeps 2 steps
    # (v7x megacore path); numerics must be identical in spirit.
    out2 = jax.block_until_ready(covid_fc_forward(x, params))
    assert out2.shape == (B, 1), out2.shape
    assert jnp.allclose(out2, ref_bf, atol=1e-3, rtol=1e-3), (out2, ref_bf)

    print("KERNEL_OK")
</pallas_src>

<mosaic_0001>
module attributes {stable_mosaic.version = 11 : i64} {
  func.func @_mlp_kernel(%arg0: i32, %arg1: memref<17x128xbf16, #tpu.memory_space<vmem>>, %arg2: memref<128x17xbf16, #tpu.memory_space<vmem>>, %arg3: memref<128x1xf32, #tpu.memory_space<vmem>>, %arg4: memref<17x128xbf16, #tpu.memory_space<vmem>>, %arg5: memref<17x1xf32, #tpu.memory_space<vmem>>, %arg6: memref<17x1xf32, #tpu.memory_space<vmem>>, %arg7: memref<1x1xf32, #tpu.memory_space<vmem>>, %arg8: memref<1x128xf32, #tpu.memory_space<vmem>>) attributes {dimension_semantics = [#tpu.dimension_semantics<parallel>], iteration_bounds = array<i64: 3>, scalar_prefetch = 0 : i64, scratch_operands = 0 : i64, tpu.core_type = #tpu.core_type<tc>, window_params = [{transform_indices = @transform_0, window_bounds = array<i64: 17, 128>}, {pipeline_mode = #tpu.pipeline_mode<synchronous>, transform_indices = @transform_1, window_bounds = array<i64: 128, 17>}, {pipeline_mode = #tpu.pipeline_mode<synchronous>, transform_indices = @transform_2, window_bounds = array<i64: 128, 1>}, {pipeline_mode = #tpu.pipeline_mode<synchronous>, transform_indices = @transform_3, window_bounds = array<i64: 17, 128>}, {pipeline_mode = #tpu.pipeline_mode<synchronous>, transform_indices = @transform_4, window_bounds = array<i64: 17, 1>}, {pipeline_mode = #tpu.pipeline_mode<synchronous>, transform_indices = @transform_5, window_bounds = array<i64: 17, 1>}, {pipeline_mode = #tpu.pipeline_mode<synchronous>, transform_indices = @transform_6, window_bounds = array<i64: 1, 1>}, {transform_indices = @transform_7, window_bounds = array<i64: 1, 128>}]} {
    %c0 = arith.constant 0 : index
    %c0_0 = arith.constant 0 : index
    %0 = vector.load %arg1[%c0, %c0_0] : memref<17x128xbf16, #tpu.memory_space<vmem>>, vector<17x128xbf16>
    %c0_1 = arith.constant 0 : index
    %c0_2 = arith.constant 0 : index
    %1 = vector.load %arg2[%c0_1, %c0_2] : memref<128x17xbf16, #tpu.memory_space<vmem>>, vector<128x17xbf16>
    %cst = arith.constant dense<0.000000e+00> : vector<128x128xf32>
    %2 = tpu.matmul %1, %0, %cst {dimension_numbers = #tpu.dot_dimension_numbers<[1], [0], [0], [1], [0, 0, 1, 1], [], []>} : vector<128x17xbf16>, vector<17x128xbf16>, vector<128x128xf32> -> vector<128x128xf32>
    %c0_3 = arith.constant 0 : index
    %c0_4 = arith.constant 0 : index
    %3 = vector.load %arg3[%c0_3, %c0_4] : memref<128x1xf32, #tpu.memory_space<vmem>>, vector<128x1xf32>
    %4 = vector.broadcast %3 : vector<128x1xf32> to vector<128x128xf32>
    %5 = arith.addf %2, %4 : vector<128x128xf32>
    %cst_5 = arith.constant 0.000000e+00 : f32
    %6 = vector.broadcast %cst_5 : f32 to vector<128x128xf32>
    %7 = arith.maximumf %5, %6 : vector<128x128xf32>
    %c0_6 = arith.constant 0 : index
    %c0_7 = arith.constant 0 : index
    %8 = vector.load %arg4[%c0_6, %c0_7] : memref<17x128xbf16, #tpu.memory_space<vmem>>, vector<17x128xbf16>
    %9 = arith.truncf %7 : vector<128x128xf32> to vector<128x128xbf16>
    %cst_8 = arith.constant dense<0.000000e+00> : vector<17x128xf32>
    %10 = tpu.matmul %8, %9, %cst_8 {dimension_numbers = #tpu.dot_dimension_numbers<[1], [0], [0], [1], [0, 0, 1, 1], [], []>} : vector<17x128xbf16>, vector<128x128xbf16>, vector<17x128xf32> -> vector<17x128xf32>
    %c0_9 = arith.constant 0 : index
    %c0_10 = arith.constant 0 : index
    %11 = vector.load %arg5[%c0_9, %c0_10] : memref<17x1xf32, #tpu.memory_space<vmem>>, vector<17x1xf32>
    %12 = vector.broadcast %11 : vector<17x1xf32> to vector<17x128xf32>
    %13 = arith.addf %10, %12 : vector<17x128xf32>
    %cst_11 = arith.constant 0.000000e+00 : f32
    %14 = vector.broadcast %cst_11 : f32 to vector<17x128xf32>
    %15 = arith.maximumf %13, %14 : vector<17x128xf32>
    %c0_12 = arith.constant 0 : index
    %c0_13 = arith.constant 0 : index
    %16 = vector.load %arg6[%c0_12, %c0_13] : memref<17x1xf32, #tpu.memory_space<vmem>>, vector<17x1xf32>
    %17 = vector.broadcast %16 : vector<17x1xf32> to vector<17x128xf32>
    %18 = arith.mulf %15, %17 : vector<17x128xf32>
    %cst_14 = arith.constant dense<0.000000e+00> : vector<128xf32>
    %19 = vector.multi_reduction <add>, %18, %cst_14 [0] : vector<17x128xf32> to vector<128xf32>
    %20 = vector.shape_cast %19 : vector<128xf32> to vector<1x128xf32>
    %c0_15 = arith.constant 0 : index
    %c0_16 = arith.constant 0 : index
    %21 = vector.load %arg7[%c0_15, %c0_16] : memref<1x1xf32, #tpu.memory_space<vmem>>, vector<1x1xf32>
    %22 = vector.broadcast %21 : vector<1x1xf32> to vector<1x128xf32>
    %23 = arith.addf %20, %22 : vector<1x128xf32>
    %c0_17 = arith.constant 0 : index
    %c0_18 = arith.constant 0 : index
    %24 = vector.load %arg8[%c0_17, %c0_18] : memref<1x128xf32, #tpu.memory_space<vmem>>, vector<1x128xf32>
    tpu.vector_store %arg8[%c0_17, %c0_18], %23 {strides = array<i32>} : memref<1x128xf32, #tpu.memory_space<vmem>>, vector<1x128xf32>,
    return
  }
  func.func @transform_0(%arg0: i32) -> (i32, i32) {
    %c0_i32 = arith.constant 0 : i32
    %c0_i32_0 = arith.constant 0 : i32
    return %c0_i32, %arg0 : i32, i32
  }
  func.func @transform_1(%arg0: i32) -> (i32, i32) {
    %c0_i32 = arith.constant 0 : i32
    %c0_i32_0 = arith.constant 0 : i32
    %c0_i32_1 = arith.constant 0 : i32
    return %c0_i32, %c0_i32_0 : i32, i32
  }
  func.func @transform_2(%arg0: i32) -> (i32, i32) {
    %c0_i32 = arith.constant 0 : i32
    %c0_i32_0 = arith.constant 0 : i32
    %c0_i32_1 = arith.constant 0 : i32
    return %c0_i32, %c0_i32_0 : i32, i32
  }
  func.func @transform_3(%arg0: i32) -> (i32, i32) {
    %c0_i32 = arith.constant 0 : i32
    %c0_i32_0 = arith.constant 0 : i32
    %c0_i32_1 = arith.constant 0 : i32
    return %c0_i32, %c0_i32_0 : i32, i32
  }
  func.func @transform_4(%arg0: i32) -> (i32, i32) {
    %c0_i32 = arith.constant 0 : i32
    %c0_i32_0 = arith.constant 0 : i32
    %c0_i32_1 = arith.constant 0 : i32
    return %c0_i32, %c0_i32_0 : i32, i32
  }
  func.func @transform_5(%arg0: i32) -> (i32, i32) {
    %c0_i32 = arith.constant 0 : i32
    %c0_i32_0 = arith.constant 0 : i32
    %c0_i32_1 = arith.constant 0 : i32
    return %c0_i32, %c0_i32_0 : i32, i32
  }
  func.func @transform_6(%arg0: i32) -> (i32, i32) {
    %c0_i32 = arith.constant 0 : i32
    %c0_i32_0 = arith.constant 0 : i32
    %c0_i32_1 = arith.constant 0 : i32
    return %c0_i32, %c0_i32_0 : i32, i32
  }
  func.func @transform_7(%arg0: i32) -> (i32, i32) {
    %c0_i32 = arith.constant 0 : i32
    %c0_i32_0 = arith.constant 0 : i32
    return %c0_i32, %arg0 : i32, i32
  }
}

</mosaic_0001>

<bundles_post_ra>
// kernel: tpu_custom_call.1
= control target key start
LH: loop header
LB: loop body
LE: loop exit
PB: predicated region body
PF: predicated region fallthrough
CT: control target
= control target key end

     0   :  { %s1308_s0 = inlined_call_operand.vmem [shape: bf16[17,384], index: 0, kind: input, shape index: {}]   ;;  %s1309_s1 = inlined_call_operand.vmem [shape: bf16[128,17], index: 1, kind: input, shape index: {}]   ;;  %s1310_s2 = inlined_call_operand.vmem [shape: f32[128,1], index: 2, kind: input, shape index: {}]   ;;  %s1311_s3 = inlined_call_operand.vmem [shape: bf16[17,128], index: 3, kind: input, shape index: {}]   ;;  %s1312_s4 = inlined_call_operand.vmem [shape: f32[17,1], index: 4, kind: input, shape index: {}]   ;;  %s1313_s5 = inlined_call_operand.vmem [shape: f32[17,1], index: 5, kind: input, shape index: {}]   ;;  %s1314_s6 = inlined_call_operand.<no memory space> [shape: f32[1,1], index: 6, kind: input, shape index: {}]   ;;  %s1315_s7 = inlined_call_operand.hbm [shape: f32[1,384], index: 7, kind: output, shape index: {}]  }
   0x1   :  { %v12_v0 = vstv %s1314_s6 }
   0x2   :  { %13 = vst [vmem:[#allocation2] sm:$0x1] %v12_v0 }
   0x3   :  { %14 = vsyncpa [#allocation5], 0 }
   0x4   :  { %16 = vsyncpa [#allocation5 + $0x1], 0  ;;  %s1095_s26 = smov 0   ;;  %s1097_s27 = smov 0  }
   0x5   :  { %s1099_s28 = smov 0   ;;  %s1101_s29 = smov 0  }
   0x6 LB: > { %s841_s6 = sadd.s32 4294967295, %s1048_s29   ;;  %s842_s30 = sadd.s32 4294967294, %s1048_s29   ;;  %s1048_s29 = sphi %s1101_s29, %s1321_s29   ;;  %s1044_s28 = sphi %s1099_s28, %s1320_s28   ;;  %s1040_s27 = sphi %s1097_s27, %s1319_s27   ;;  %s1036_s26 = sphi %s1095_s26, %s1318_s26  }
   0x7   : > { %s1118_s8 = sadd.s32 1, %s1048_s29   ;;  %s29_s9 = sadd.s32 1, %s1044_s28 }
   0x8   : > { %s26_s10 = ssub.s32 %s1048_s29, %s1118_s8  ;;  %p36_p0 = scmp.ne.s32.totalorder %s1044_s28, %s1040_s27 }
   0x9   : > { %p27_p1 = scmp.eq.s32.totalorder %s26_s10, 0  ;;  %p37_p2 = scmp.eq.s32.totalorder %s1048_s29, 0 }
   0xa   : > { %p192_p3 = scmp.eq.s32.totalorder %s841_s6, 2  ;;  %p197_p4 = scmp.ne.s32.totalorder %s1040_s27, %s1036_s26 }
   0xb   : > { %s1131_s11 = scalar_select %p27_p1, %s1044_s28, %s29_s9  }
   0xc   : > { %p38_p5 = por %p37_p2, %p36_p0  ;;  %p1133_p6 = por %p192_p3, %p36_p0 }
   0xd   : > { %p198_p7 = scmp.eq.s32.totalorder %s842_s30, 2  ;;  %p844_p9 = scmp.ge.s32.totalorder %s1048_s29, 3 }
   0xf   : > { %p1137_p8 = por %p198_p7, %p197_p4  ;;  %232 = sbr.rel (%p844_p9) target bundleno = 29 (0x1d), region = 40 }
  0x16   : > { %235 = sbr.rel (!%p38_p5) target bundleno = 29 (0x1d), region = 44  ;;  %s237_s14 = sand.u32 (%p38_p5), 1, %s1044_s28  }
  0x17   : > { %s845_s15 = sshll.u32 (%p38_p5), %s1048_s29, 2  ;;  %s930_s16 = smul.u32 (%p38_p5), 12, %s237_s14 }
  0x18   : > { %s241_s19 = scalar_lea.vmem (%p38_p5), %s1308_s0, %s845_s15 }
  0x19   : > { %v257_v1 = vld [vmem:[%s241_s19] sm:$0xf] (%p38_p5)  ;;  %v259_v2 = vld [vmem:[%s241_s19 + $0xc] sm:$0xf] (%p38_p5)  ;;  %v261_v3 = vld [vmem:[%s241_s19 + $0x18] sm:$0xf] (%p38_p5) }
  0x1a   : > { %s239_s20 = scalar_lea.vmem (%p38_p5), [#allocation3], %s930_s16 }
  0x1b   : > { %258 = vst [vmem:[%s239_s20] sm:$0xf] (%p38_p5), %v257_v1  ;;  %260 = vst [vmem:[%s239_s20 + $0x4] sm:$0xf] (%p38_p5), %v259_v2 }
  0x1c   : > { %262 = vst [vmem:[%s239_s20 + $0x8] sm:$0xf] (%p38_p5), %v261_v3 }
  0x1d PF: > { %p846_p10 = scmp.ge.s32.totalorder %s1048_s29, 1  ;;  %p290_p11 = scmp.lt.s32.totalorder %s1048_s29, 4 }
  0x1f   : > { %p291_p12 = pnand %p846_p10, %p290_p11 }
  0x20   : > { %s1150_s21 = sand.u32 (!%p291_p12), 1, %s1040_s27   ;;  %v976_v4 = vld [vmem:[%s1309_s1] sm:$0xff] (!%p291_p12)   ;;  %vm517_vm0 = vcmask (!%p291_p12), 1040384   ;;  %vm492_vm1 = vcmask (!%p291_p12), 138240   ;;  %v1050_v5 = vmov (!%p291_p12), 0   ;;  %v977_v10 = vld [vmem:[%s1309_s1 + $0x8] sm:$0xff] (!%p291_p12)  }
  0x21   : > { %294 = sbr.rel (%p291_p12) target bundleno = 552 (0x228), region = 85  ;;  %972 = vset.pattern.permute.xlu0 (!%p291_p12), %v1050_v5  ;;  %973 = vset.pattern.permute.xlu1 (!%p291_p12), %v1050_v5  ;;  %v519_v7 = vsel (!%p291_p12), %vm517_vm0, 65535, %v1050_v5  ;;  %v347_v11 = vld [vmem:[%s1310_s2] sm:$0xff] (!%p291_p12)  ;;  %v978_v12 = vld [vmem:[%s1309_s1 + $0x10] sm:$0xff] (!%p291_p12)   ;;  %v348_v14 = vld [vmem:[%s1310_s2 + $0x8] sm:$0xff] (!%p291_p12)  ;;  %s867_s17 = sshll.u32 (!%p291_p12), %s841_s6, 4 }
  0x22   : > { %s931_s24 = smul.u32 (!%p291_p12), 12, %s1150_s21  ;;  %894 = vmatprep.mubr.msk.bf16.mxu0 (!%p291_p12), %vm492_vm1, %v976_v4  ;;  %365 = vperm.xlu0 (!%p291_p12), %972, %v347_v11   ;;  %v349_v13 = vld [vmem:[%s1310_s2 + $0x10] sm:$0xff] (!%p291_p12)  ;;  %v350_v15 = vld [vmem:[%s1310_s2 + $0x18] sm:$0xff] (!%p291_p12)  ;;  %v351_v16 = vld [vmem:[%s1310_s2 + $0x20] sm:$0xff] (!%p291_p12)  ;;  %s326_s18 = scalar_lea.vmem (!%p291_p12), [#allocation4], %s1150_s21 }
  0x23   : > { %375 = vperm.xlu1 (!%p291_p12), %973, %v349_v13   ;;  %v979_v17 = vld [vmem:[%s1309_s1 + $0x18] sm:$0xff] (!%p291_p12)   ;;  %v352_v18 = vld [vmem:[%s1310_s2 + $0x28] sm:$0xff] (!%p291_p12)  ;;  %v980_v19 = vld [vmem:[%s1309_s1 + $0x20] sm:$0xff] (!%p291_p12)   ;;  %s781_s19 = sshll.u32 (!%p291_p12), %s326_s18, 4  ;;  %s1265_s23 = scalar_lea.hbm (!%p291_p12), %s1315_s7, %s867_s17  ;;  %s1267_s19 = int_to_ptr.vmem [resolvable:$true] %s781_s19 }
  0x24   : > { %s299_s25 = scalar_lea.vmem (!%p291_p12), [#allocation3], %s931_s24  ;;  %v353_v20 = vld [vmem:[%s1310_s2 + $0x30] sm:$0xff] (!%p291_p12)  ;;  %v354_v21 = vld [vmem:[%s1310_s2 + $0x38] sm:$0xff] (!%p291_p12)  ;;  %v355_v22 = vld [vmem:[%s1310_s2 + $0x40] sm:$0xff] (!%p291_p12)  ;;  %s769_s24 = scalar_lea.sflag (!%p291_p12), [#allocation5], %s1150_s21 }
  0x25   : > { %v974_v6 = vld [vmem:[%s299_s25] sm:$0xff] (!%p291_p12)   ;;  %v975_v8 = vld [vmem:[%s299_s25 + $0x8] ss:$0 sps:$4 sm:$0x11] (!%p291_p12)   ;;  %v358_v27 = vld [vmem:[%s1310_s2 + $0x58] sm:$0xff] (!%p291_p12)  ;;  %s986_s25 = scalar_lea.vmem (!%p291_p12), %s1267_s19, 16 }
  0x26   : > { %890 = vmatprep.subr.bf16.mxu0 (!%p291_p12), %v974_v6  ;;  %v521_v9 = vand.u32 (!%p291_p12), %v975_v8, %v519_v7  ;;  %370 = vperm.xlu0 (!%p291_p12), %972, %v348_v14   ;;  %v356_v23 = vld [vmem:[%s1310_s2 + $0x48] sm:$0xff] (!%p291_p12)  ;;  %v982_v25 = vld [vmem:[%s1309_s1 + $0x30] sm:$0xff] (!%p291_p12)   ;;  %v359_v28 = vld [vmem:[%s1310_s2 + $0x60] sm:$0xff] (!%p291_p12)  ;;  %p987_p13 = scmp.ne.s32.totalorder (!%p291_p12), %s1267_s19, %s986_s25  ;;  %s1051_s6 = smov (!%p291_p12), [#allocation4]  }
  0x27   : > { %891 = vmatpush3.bf16.msra.mxu0 (!%p291_p12), %v974_v6  ;;  %380 = vperm.xlu1 (!%p291_p12), %973, %v350_v15   ;;  %v981_v24 = vld [vmem:[%s1309_s1 + $0x28] sm:$0xff] (!%p291_p12)   ;;  %v357_v26 = vld [vmem:[%s1310_s2 + $0x50] sm:$0xff] (!%p291_p12)  ;;  %v983_v30 = vld [vmem:[%s1309_s1 + $0x38] sm:$0xff] (!%p291_p12)   ;;  %s990_s30 = sshll.u32 (!%p291_p12), %s1051_s6, 4  ;;  %s991_s30 = int_to_ptr.vmem [resolvable:$false] %s990_s30 }
  0x28   : > { %892 = vmatprep.subr.bf16.mxu0 %v521_v9  ;;  %v360_v29 = vld [vmem:[%s1310_s2 + $0x68] sm:$0xff]  ;;  %v361_v31 = vld [vmem:[%s1310_s2 + $0x70] sm:$0xff]  ;;  %v362_v32 = vld [vmem:[%s1310_s2 + $0x78] sm:$0xff]  ;;  %p988_p0 = pnand %p987_p13, %p1133_p6  ;;  %s992_s9 = scalar_lea.vmem %s991_s30, 32 }
  0x29   : > { %v647_v33 = vld [vmem:[%s1312_s4] sm:$0xff]  ;;  %v648_v34 = vld [vmem:[%s1312_s4 + $0x8] sm:$0xff]  ;;  %v649_v35 = vld [vmem:[%s1312_s4 + $0x10] sm:$0x1]  ;;  %p993_p2 = scmp.lt.s32.totalorder %s1267_s19, %s991_s30  ;;  %p994_p3 = scmp.lt.s32.totalorder %s992_s9, %s986_s25 }
  0x2a   : > { %385 = vperm.xlu0 %972, %v351_v16   ;;  %v726_v36 = vld [vmem:[%s1313_s5] sm:$0xff]  ;;  %v727_v37 = vld [vmem:[%s1313_s5 + $0x8] sm:$0xff]  ;;  %v728_v38 = vld [vmem:[%s1313_s5 + $0x10] sm:$0x1]  ;;  %p989_p1 = pneg %p988_p0 }
  0x2b   : > { %893 = vmatpush3.bf16.msra.mxu0 %v521_v9  ;;  %390 = vperm.xlu1 %973, %v352_v18   ;;  %v756_v39 = vld [vmem:[#allocation2] sm:$0x1]  ;;  %p995_p4 = por %p994_p3, %p993_p2 }
  0x2c   : > { %v984_v40 = vld [vmem:[%s1311_s3] sm:$0xff]  }
  0x2d   : > { %926 = vmatprep.mubr.bf16.mxu1 %v984_v40  ;;  %p996_p5 = pnand %p995_p4, %p989_p1 }
  0x2e   : > { %895 = vmatmul.mubr.msk.bf16.vlgmr.msra.gmra.mrb[0].mxu0 %vm492_vm1, %v977_v10  ;;  %395 = vperm.xlu0 %972, %v353_v20  }
  0x2f   : > { %898 = vmatprep.mubr.msk.bf16.mxu0 %vm492_vm1, %v978_v12  ;;  %400 = vperm.xlu1 %973, %v354_v21  }
  0x32   : > { %405 = vperm.xlu0 %972, %v355_v22  }
  0x33   : > { %410 = vperm.xlu1 %973, %v356_v23  }
  0x36   : > { %899 = vmatmul.mubr.msk.bf16.gmra.mrb[4].mxu0 %vm492_vm1, %v979_v17  ;;  %415 = vperm.xlu0 %972, %v357_v26  }
  0x37   : > { %902 = vmatprep.mubr.msk.bf16.mxu0 %vm492_vm1, %v980_v19  ;;  %420 = vperm.xlu1 %973, %v358_v27  }
  0x3a   : > { %425 = vperm.xlu0 %972, %v359_v28  }
  0x3b   : > { %430 = vperm.xlu1 %973, %v360_v29  }
  0x3e   : > { %903 = vmatmul.mubr.msk.bf16.gmra.mrb[8].mxu0 %vm492_vm1, %v981_v24  ;;  %435 = vperm.xlu0 %972, %v361_v31  }
  0x3f   : > { %906 = vmatprep.mubr.msk.bf16.mxu0 %vm492_vm1, %v982_v25  ;;  %440 = vperm.xlu1 %973, %v362_v32  }
  0x42   : > { %652 = vperm.xlu0 %972, %v647_v33  }
  0x43   : > { %657 = vperm.xlu1 %973, %v648_v34  }
  0x46   : > { %907 = vmatmul.mubr.msk.bf16.gmra.mrb[12].mxu0 %vm492_vm1, %v983_v30  ;;  %662 = vperm.xlu0 %972, %v649_v35  }
  0x47   : > { %731 = vperm.xlu1 %973, %v726_v36  }
  0x4a   : > { %736 = vperm.xlu0 %972, %v727_v37  }
  0x4b   : > { %741 = vperm.xlu1 %973, %v728_v38  }
  0x4e   : > { %759 = vperm.xlu0 %972, %v756_v39  }
  0xa1   : > { %v366_v41 = vpop.permute.xlu0 %365 }
  0xa2   : > { %v376_v42 = vpop.permute.xlu1 %375 }
  0xa5   : > { %v371_v43 = vpop.permute.xlu0 %370 }
  0xa6   : > { %v381_v44 = vpop.permute.xlu1 %380 }
  0xa9   : > { %v386_v45 = vpop.permute.xlu0 %385 }
  0xaa   : > { %v391_v46 = vpop.permute.xlu1 %390 }
  0xad   : > { %v396_v47 = vpop.permute.xlu0 %395 }
  0xae   : > { %v401_v51 = vpop.permute.xlu1 %400 }
  0xb1   : > { %v406_v59 = vpop.permute.xlu0 %405 }
  0xb2   : > { %v411_v63 = vpop.permute.xlu1 %410 }
  0xb5   : > { %v416_v8 = vpop.permute.xlu0 %415 }
  0xb6   : > { %v421_v12 = vpop.permute.xlu1 %420 }
  0xb9   : > { %v426_v20 = vpop.permute.xlu0 %425 }
  0xba   : > { %v431_v25 = vpop.permute.xlu1 %430 }
  0xbd   : > { %v436_v32 = vpop.permute.xlu0 %435 }
  0xbe   : > { %v441_v37 = vpop.permute.xlu1 %440 }
 0x101   : > { %v896_v48 = vpop.f32.mrb[0].mxu0 }
 0x102   : > { %v566_v49 = vadd.f32 %v896_v48, %v376_v42  ;;  %v557_v50 = vpop.f32.mrb[1].mxu0 }
 0x103   : > { %v558_v52 = vadd.f32 %v557_v50, %v366_v41  ;;  %v897_v53 = vpop.f32.mrb[2].mxu0  ;;  %v653_v50 = vpop.permute.xlu0 %652 }
 0x104   : > { %v569_v54 = vadd.f32 %v897_v53, %v381_v44  ;;  %v560_v55 = vpop.f32.mrb[3].mxu0  ;;  %v622_v57 = vmax.f32 %v566_v49, 0.0  ;;  %v985_v49 = vld [vmem:[%s1311_s3 + $0x8] ss:$0 sps:$4 sm:$0x11]  }
 0x105   : > { %v561_v56 = vadd.f32 %v560_v55, %v371_v43  ;;  %v620_v60 = vmax.f32 %v558_v52, 0.0 }
 0x106   : > { %v623_v58 = vmax.f32 %v569_v54, 0.0 }
 0x107   : > { %v621_v61 = vmax.f32 %v561_v56, 0.0  ;;  %v663_v52 = vpop.permute.xlu0 %662 }
 0x108   : > { %v640_v62 = vpack.c.bf16 %v623_v58, %v622_v57 }
 0x109   : > { %v900_v0 = vpop.f32.mrb[4].mxu0  ;;  %v639_v1 = vpack.c.bf16 %v621_v61, %v620_v60 }
 0x10a   : > { %v582_v2 = vadd.f32 %v900_v0, %v396_v47  ;;  %v573_v3 = vpop.f32.mrb[5].mxu0 }
 0x10b   : > { %v574_v4 = vadd.f32 %v573_v3, %v386_v45  ;;  %v901_v5 = vpop.f32.mrb[6].mxu0  ;;  %910 = vmatprep.subr.bf16.mxu1 %v639_v1 }
 0x10c   : > { %v585_v6 = vadd.f32 %v901_v5, %v401_v51  ;;  %v576_v7 = vpop.f32.mrb[7].mxu0  ;;  %911 = vmatpush3.bf16.msra.mxu1 %v639_v1  ;;  %v626_v10 = vmax.f32 %v582_v2, 0.0  ;;  %v658_v51 = vpop.permute.xlu1 %657 }
 0x10d   : > { %v577_v9 = vadd.f32 %v576_v7, %v391_v46  ;;  %912 = vmatprep.subr.bf16.mxu1 %v640_v62  ;;  %v624_v13 = vmax.f32 %v574_v4, 0.0  ;;  %v737_v1 = vpop.permute.xlu0 %736  ;;  %v762_v7 = vlaneseq }
 0x10e   : > { %v627_v11 = vmax.f32 %v585_v6, 0.0 }
 0x10f   : > { %v625_v14 = vmax.f32 %v577_v9, 0.0 }
 0x110   : > { %v642_v15 = vpack.c.bf16 %v627_v11, %v626_v10  ;;  %913 = vmatpush3.bf16.msra.mxu1 %v640_v62  ;;  %v732_v53 = vpop.permute.xlu1 %731  ;;  %v763_v10 = vshrl.u32 %v762_v7, 7 }
 0x111   : > { %v641_v16 = vpack.c.bf16 %v625_v14, %v624_v13  ;;  %v904_v17 = vpop.f32.mrb[8].mxu0 }
 0x112   : > { %v598_v18 = vadd.f32 %v904_v17, %v416_v8  ;;  %v589_v19 = vpop.f32.mrb[9].mxu0  ;;  %v764_v13 = vsub.s32 0, %v763_v10 }
 0x113   : > { %v590_v21 = vadd.f32 %v589_v19, %v406_v59  ;;  %v905_v22 = vpop.f32.mrb[10].mxu0  ;;  %914 = vmatprep.subr.bf16.mxu1 %v641_v16 }
 0x114   : > { %v601_v23 = vadd.f32 %v905_v22, %v421_v12  ;;  %v592_v24 = vpop.f32.mrb[11].mxu0  ;;  %915 = vmatpush3.bf16.msra.mxu1 %v641_v16  ;;  %v630_v27 = vmax.f32 %v598_v18, 0.0 }
 0x115   : > { %v593_v26 = vadd.f32 %v592_v24, %v411_v63  ;;  %916 = vmatprep.subr.bf16.mxu1 %v642_v15  ;;  %v628_v29 = vmax.f32 %v590_v21, 0.0  ;;  %v742_v63 = vpop.permute.xlu1 %741 }
 0x116   : > { %v631_v28 = vmax.f32 %v601_v23, 0.0 }
 0x117   : > { %v629_v30 = vmax.f32 %v593_v26, 0.0 }
 0x118   : > { %v644_v31 = vpack.c.bf16 %v631_v28, %v630_v27  ;;  %917 = vmatpush3.bf16.msra.mxu1 %v642_v15  ;;  %v760_v15 = vpop.permute.xlu0 %759 }
 0x119   : > { %v643_v33 = vpack.c.bf16 %v629_v30, %v628_v29  ;;  %v908_v34 = vpop.f32.mrb[12].mxu0  ;;  %v765_v17 = vrot.slane %v760_v15, %v764_v13 }
 0x11a   : > { %v614_v35 = vadd.f32 %v908_v34, %v436_v32  ;;  %v605_v36 = vpop.f32.mrb[13].mxu0 }
 0x11b   : > { %v606_v38 = vadd.f32 %v605_v36, %v426_v20  ;;  %v909_v39 = vpop.f32.mrb[14].mxu0  ;;  %918 = vmatprep.subr.bf16.mxu1 %v643_v33 }
 0x11c   : > { %v617_v40 = vadd.f32 %v909_v39, %v441_v37  ;;  %v608_v41 = vpop.f32.mrb[15].mxu0  ;;  %919 = vmatpush3.bf16.msra.mxu1 %v643_v33  ;;  %v634_v43 = vmax.f32 %v614_v35, 0.0 }
 0x11d   : > { %v609_v42 = vadd.f32 %v608_v41, %v431_v25  ;;  %920 = vmatprep.subr.bf16.mxu1 %v644_v31  ;;  %v632_v45 = vmax.f32 %v606_v38, 0.0 }
 0x11e   : > { %v635_v44 = vmax.f32 %v617_v40, 0.0 }
 0x11f   : > { %v633_v46 = vmax.f32 %v609_v42, 0.0 }
 0x120   : > { %v646_v47 = vpack.c.bf16 %v635_v44, %v634_v43  ;;  %921 = vmatpush3.bf16.msra.mxu1 %v644_v31 }
 0x121   : > { %v645_v48 = vpack.c.bf16 %v633_v46, %v632_v45 }
 0x123   : > { %922 = vmatprep.subr.bf16.mxu1 %v645_v48 }
 0x124   : > { %923 = vmatpush3.bf16.msra.mxu1 %v645_v48 }
 0x125   : > { %924 = vmatprep.subr.bf16.mxu1 %v646_v47 }
 0x128   : > { %925 = vmatpush3.bf16.msra.mxu1 %v646_v47 }
 0x12b   : > { %927 = vmatmul.mubr.bf16.vlgmr.msra.gmra.mrb[0].mxu1 %v985_v49 }
 0x1fe   : > { %v928_v54 = vpop.f32.mrb[0].mxu1 }
 0x1ff   : > { %v718_v55 = vadd.f32 %v928_v54, %v663_v52  ;;  %v709_v56 = vpop.f32.mrb[1].mxu1 }
 0x200   : > { %v710_v57 = vadd.f32 %v709_v56, %v653_v50  ;;  %v929_v58 = vpop.f32.mrb[2].mxu1 }
 0x201   : > { %v725_v59 = vmax.f32 %v718_v55, 0.0  ;;  %v712_v60 = vpop.f32.mrb[3].mxu1 }
 0x202   : > { %v723_v61 = vmax.f32 %v710_v57, 0.0  ;;  %v713_v62 = vadd.f32 %v712_v60, %v658_v51 }
 0x203   : > { %v746_v2 = vmul.f32 %v742_v63, %v725_v59 }
 0x204   : > { %v724_v0 = vmax.f32 %v713_v62, 0.0  ;;  %v744_v3 = vmul.f32 %v732_v53, %v723_v61 }
 0x205   : > { %v748_v6 = vsel %vm517_vm0, %v746_v2, 0.0 }
 0x206   : > { %v745_v4 = vmul.f32 %v737_v1, %v724_v0 }
 0x208   : > { %v747_v5 = vadd.f32 %v745_v4, %v744_v3 }
 0x20a   : > { %v749_v8 = vadd.f32 %v748_v6, %v747_v5 }
 0x20c   : > { %v750_v9 = vrot.slane %v749_v8, 4 }
 0x20e   : > { %v751_v11 = vadd.f32 %v750_v9, %v749_v8 }
 0x210   : > { %v752_v12 = vrot.slane %v751_v11, 2 }
 0x212   : > { %v753_v14 = vadd.f32 %v752_v12, %v751_v11 }
 0x214   : > { %v754_v16 = vrot.slane %v753_v14, 1 }
 0x216   : > { %v755_v18 = vadd.f32 %v754_v16, %v753_v14 }
 0x218   : > { %v766_v19 = vadd.f32 %v765_v17, %v755_v18 }
 0x21a   : > { %767 = vst [vmem:[%s326_s18] sm:$0x1] %v766_v19 }
 0x21b   : > { %999 = shalt.err (!%p996_p5)
}
 0x21c   : > { %s1000_s21 = scalar_lea.hbm %s1265_s23, 16  ;;  %s1004_s15 = scalar_lea.hbm %s1315_s7, 48 }
 0x21d   : > { %p1001_p7 = scmp.ne.s32.totalorder %s1265_s23, %s1000_s21  ;;  %p1005_p11 = scmp.lt.u32.totalorder %s1265_s23, %s1315_s7 }
 0x21e   : > { %p1006_p12 = scmp.lt.u32.totalorder %s1004_s15, %s1000_s21  ;;  %p1008_p0 = scmp.lt.u32.totalorder %s1000_s21, %s1265_s23 }
 0x21f   : > { %p1002_p9 = pnand %p1001_p7, %p1133_p6 }
 0x220   : > { %p1007_p13 = por %p1006_p12, %p1005_p11 }
 0x221   : > { %p1003_p10 = pneg %p1002_p9 }
 0x222   : > { %p1009_p1 = por %p1008_p0, %p1007_p13 }
 0x224   : > { %p1010_p2 = pnand %p1009_p1, %p1003_p10 }
 0x226   : > { %1013 = shalt.err (!%p1010_p2)
}
 0x227   : > { %932 = dma.vmem_to_hbm [thread:$0]  (%p1133_p6), %s1267_s19, 16, %s1265_s23, %s769_s24  }
 0x228 PF: > { %p938_p3 = scmp.ge.s32.totalorder %s1048_s29, 2  ;;  %s793_s18 = sand.u32 1, %s1036_s26  }
 0x229   : > { %s794_s20 = scalar_lea.sflag [#allocation5], %s793_s18 }
 0x22a   : > { %p935_p4 = pnand %p938_p3, %p1137_p8 }
 0x22c   : > { %1031 = dma.done.wait (!%p935_p4), %s794_s20, 16  }
 0x22d   : > { %1033 = vsyncadd (!%p935_p4), %s794_s20, 4294967280  ;;  %p19_p5 = scmp.ge.s32.totalorder %s1118_s8, 5   ;;  %s1318_s26 = smov %s1040_s27 }
 0x22e   : > { %s1319_s27 = smov %s1044_s28  ;;  %s1320_s28 = smov %s1131_s11 }
 0x22f   : > { %s1321_s29 = smov %s1118_s8  ;;  %21 = sbr.rel (!%p19_p5) target bundleno = 6 (0x6), region = 129 }
 0x236   :  { %798 = vsyncpa [#allocation5], 1 }
 0x237   :  { %800 = vsyncpa [#allocation5 + $0x1], 1 }

</bundles_post_ra>
